<compile_context>
chip_gen: v6e
topology: v6e:2x2x1
jax: 0.10.0
libtpu: 0.0.40
codegen_flags: <defaults>
</compile_context>

<pallas_src>
import functools
import math

import jax
import jax.numpy as jnp
from jax.experimental import pallas as pl
from jax.experimental.pallas import tpu as pltpu

_BN_EPS = 1e-5


def _conv_bn_kernel(x_ref, w_ref, shift_ref, *rest, K, Cin, stride, Lout, relu, has_res):
    """Fused Conv1d (single deep matmul) + folded BN shift + optional residual + ReLU.

    x_ref    : (stride, Cin, Lph)  stride-phase decomposed padded input, one batch element
    w_ref    : (Cout, K*Cin)       conv weight with BN scale folded in, tap-major columns
    shift_ref: (Cout, 1)           beta - running_mean * gamma / sqrt(var + eps)
    res_ref  : (Cout, Lout)        (only when has_res) residual added after BN
    out_ref  : (Cout, Lout)
    scratch  : (K*Cin, Lout) VMEM  (only when K > 1) packed tap operand
    """
    if has_res:
        res_ref, out_ref, *scratch = rest
    else:
        out_ref, *scratch = rest

    if K == 1:
        taps = x_ref[0, :, 0:Lout]
    else:
        tap_ref = scratch[0]
        for j in range(K):                      # static unroll: pack taps into one operand
            p, q = j % stride, j // stride      # tap j lives in phase p at offset q
            tap_ref[j * Cin:(j + 1) * Cin, :] = x_ref[p, :, q:q + Lout]
        taps = tap_ref[...]

    y = jnp.dot(w_ref[...], taps, preferred_element_type=jnp.float32)  # one MXU matmul
    y = y + shift_ref[...]
    if has_res:
        y = y + res_ref[...].astype(jnp.float32)
    if relu:
        y = jnp.maximum(y, 0.0)
    out_ref[...] = y.astype(out_ref.dtype)


def conv1d_bn(x, w, gamma, beta, mean, var, *, stride, pad, relu,
              residual=None, dot_dtype=None):
    """y = [ReLU]( BN(Conv1d(x, w, stride, pad)) [+ residual] ).

    x: (B, Cin, L)   w: (Cout, Cin, K)   BN params: (Cout,)
    """
    B, Cin, L = x.shape
    Cout, _, K = w.shape
    Lp = L + 2 * pad
    Lout = (Lp - K) // stride + 1
    assert Lout >= 1

    # ---- stride-phase decomposition of the padded input (no data duplication) ------
    # xph[b, p, c, t] = x_pad[b, c, t*stride + p]; tap j of output t == xph[j%stride][t + j//stride]
    Qh = (K - 1) // stride
    Lph = max(Lout + Qh, -(-Lp // stride))
    total = stride * Lph
    xp = jnp.pad(x, ((0, 0), (0, 0), (pad, total - L - pad)))
    xph = xp.reshape(B, Cin, Lph, stride).transpose(0, 3, 1, 2)     # (B, stride, Cin, Lph)

    # ---- fold BN scale into the conv weights; keep only a per-channel shift ---------
    inv_std = jax.lax.rsqrt(var.astype(jnp.float32) + _BN_EPS)
    scale = gamma.astype(jnp.float32) * inv_std                     # (Cout,)
    shift = (beta.astype(jnp.float32) - mean.astype(jnp.float32) * scale).reshape(Cout, 1)
    w2d = (jnp.transpose(w, (0, 2, 1)).astype(jnp.float32)
           * scale[:, None, None]).reshape(Cout, K * Cin)           # (Cout, K*Cin), tap-major

    if dot_dtype is not None:                                       # bf16 knob for v6e/v7x
        xph = xph.astype(dot_dtype)
        w2d = w2d.astype(dot_dtype)

    has_res = residual is not None

    in_specs = [
        pl.BlockSpec((None, stride, Cin, Lph), lambda b: (b, 0, 0, 0)),
        pl.BlockSpec((Cout, K * Cin), lambda b: (0, 0)),
        pl.BlockSpec((Cout, 1), lambda b: (0, 0)),
    ]
    inputs = [xph, w2d, shift]
    if has_res:
        in_specs.append(pl.BlockSpec((None, Cout, Lout), lambda b: (b, 0, 0)))
        inputs.append(residual)

    scratch_shapes = []
    if K > 1:
        scratch_shapes.append(pltpu.VMEM((K * Cin, Lout), xph.dtype))

    itemsize = jnp.dtype(xph.dtype).itemsize
    bytes_accessed = (xph.size * itemsize + w2d.size * itemsize + shift.size * 4
                      + B * Cout * Lout * 4 * (2 if has_res else 1))
    cost = pl.CostEstimate(flops=2 * B * Cout * K * Cin * Lout,
                           transcendentals=0,
                           bytes_accessed=bytes_accessed)

    kernel = functools.partial(_conv_bn_kernel, K=K, Cin=Cin, stride=stride,
                               Lout=Lout, relu=relu, has_res=has_res)
    return pl.pallas_call(
        kernel,
        out_shape=jax.ShapeDtypeStruct((B, Cout, Lout), x.dtype),
        grid=(B,),
        in_specs=in_specs,
        out_specs=pl.BlockSpec((None, Cout, Lout), lambda b: (b, 0, 0)),
        scratch_shapes=tuple(scratch_shapes),
        compiler_params=pltpu.CompilerParams(dimension_semantics=("parallel",)),
        cost_estimate=cost,
    )(*inputs)


def init_resblock_params(key, in_channel, out_channel, kernel_size):
    """Deterministic synthetic parameters matching the PyTorch module's shapes."""
    ks = jax.random.split(key, 6)

    def conv_w(k_, co, ci):
        bound = 1.0 / math.sqrt(ci * kernel_size)
        return jax.random.uniform(k_, (co, ci, kernel_size), jnp.float32, -bound, bound)

    def bn(k_, c):
        k1, k2, k3, k4 = jax.random.split(k_, 4)
        gamma = jax.random.uniform(k1, (c,), jnp.float32, 0.5, 1.5)
        beta = 0.1 * jax.random.normal(k2, (c,), jnp.float32)
        mean = 0.1 * jax.random.normal(k3, (c,), jnp.float32)
        var = jax.random.uniform(k4, (c,), jnp.float32, 0.5, 1.5)
        return gamma, beta, mean, var

    return {
        "w1": conv_w(ks[0], out_channel, in_channel),
        "bn1": bn(ks[1], out_channel),
        "w2": conv_w(ks[2], out_channel, out_channel),
        "bn2": bn(ks[3], out_channel),
        "w_sc": conv_w(ks[4], out_channel, in_channel),
        "bn_sc": bn(ks[5], out_channel),
    }


def resblock_forward(x, params, *, kernel_size, stride, dot_dtype=None):
    """out = relu( BN2(Conv2(relu(BN1(Conv1(x))))) + BN_sc(Conv_sc(x)) )."""
    pad_conv = (kernel_size - 1) // stride   # PyTorch: int((kernel_size - 1) / stride)
    pad_sc = (kernel_size - 1) // 2          # PyTorch: int((kernel_size - 1) / 2)
    # main branch: Conv -> BN -> ReLU
    h = conv1d_bn(x, params["w1"], *params["bn1"], stride=stride, pad=pad_conv,
                  relu=True, dot_dtype=dot_dtype)
    # shortcut branch: Conv -> BN  (no residual input -> no zeros buffer DMA'd)
    sc = conv1d_bn(x, params["w_sc"], *params["bn_sc"], stride=stride, pad=pad_sc,
                   relu=False, dot_dtype=dot_dtype)
    # main branch second Conv -> BN, residual add + final ReLU fused into the kernel
    out = conv1d_bn(h, params["w2"], *params["bn2"], stride=stride, pad=pad_conv,
                    relu=True, residual=sc, dot_dtype=dot_dtype)
    return out


# ---- pure-JAX reference (for correctness check only) -------------------------------
def _conv1d_ref(x, w, stride, pad):
    return jax.lax.conv_general_dilated(
        x, w, window_strides=(stride,), padding=[(pad, pad)],
        dimension_numbers=("NCH", "OIH", "NCH"))


def _bn_ref(x, bn):
    g, b, m, v = bn
    return (x - m[None, :, None]) / jnp.sqrt(v[None, :, None] + _BN_EPS) * g[None, :, None] \
        + b[None, :, None]


def resblock_ref(x, params, *, kernel_size, stride):
    pad_conv = (kernel_size - 1) // stride
    pad_sc = (kernel_size - 1) // 2
    h = jax.nn.relu(_bn_ref(_conv1d_ref(x, params["w1"], stride, pad_conv), params["bn1"]))
    out = _bn_ref(_conv1d_ref(h, params["w2"], stride, pad_conv), params["bn2"])
    sc = _bn_ref(_conv1d_ref(x, params["w_sc"], stride, pad_sc), params["bn_sc"])
    return jax.nn.relu(out + sc)


if __name__ == "__main__":
    import numpy as np

    key = jax.random.PRNGKey(0)

    # NOTE: exactly as in the original PyTorch module, `out += shortcut(x)` requires the
    # main branch (two strided convs) and the shortcut (one strided conv) to produce equal
    # lengths.  For non-degenerate inputs that only holds for kernel_size=1/stride=1; the
    # default stride=2 config only runs for tiny lengths (both exercised below).
    configs = [
        dict(B=2, Cin=4, Cout=8, L=16, kernel_size=1, stride=1),
        dict(B=2, Cin=4, Cout=8, L=2, kernel_size=3, stride=2),   # module's default stride=2
    ]
    for i, cfg in enumerate(configs):
        kx, kp = jax.random.split(jax.random.fold_in(key, i))
        x = jax.random.normal(kx, (cfg["B"], cfg["Cin"], cfg["L"]), jnp.float32)
        params = init_resblock_params(kp, cfg["Cin"], cfg["Cout"], cfg["kernel_size"])
        out = resblock_forward(x, params, kernel_size=cfg["kernel_size"], stride=cfg["stride"])
        out = jax.block_until_ready(out)
        ref = resblock_ref(x, params, kernel_size=cfg["kernel_size"], stride=cfg["stride"])
        np.testing.assert_allclose(np.asarray(out), np.asarray(ref), rtol=2e-2, atol=2e-2)

    print("KERNEL_OK")
</pallas_src>

<mosaic_0001>
module attributes {stable_mosaic.version = 11 : i64} {
  func.func @_conv_bn_kernel(%arg0: i32, %arg1: memref<1x1x4x16xf32, #tpu.memory_space<vmem>>, %arg2: memref<8x4xf32, #tpu.memory_space<vmem>>, %arg3: memref<8x1xf32, #tpu.memory_space<vmem>>, %arg4: memref<1x8x16xf32, #tpu.memory_space<vmem>>) attributes {dimension_semantics = [#tpu.dimension_semantics<parallel>], iteration_bounds = array<i64: 2>, scalar_prefetch = 0 : i64, scratch_operands = 0 : i64, tpu.core_type = #tpu.core_type<tc>, window_params = [{transform_indices = @transform_0, window_bounds = array<i64: 1, 1, 4, 16>}, {pipeline_mode = #tpu.pipeline_mode<synchronous>, transform_indices = @transform_1, window_bounds = array<i64: 8, 4>}, {pipeline_mode = #tpu.pipeline_mode<synchronous>, transform_indices = @transform_2, window_bounds = array<i64: 8, 1>}, {transform_indices = @transform_3, window_bounds = array<i64: 1, 8, 16>}]} {
    %c0 = arith.constant 0 : index
    %c0_0 = arith.constant 0 : index
    %c0_1 = arith.constant 0 : index
    %c0_2 = arith.constant 0 : index
    %0 = vector.load %arg1[%c0, %c0_0, %c0_1, %c0_2] : memref<1x1x4x16xf32, #tpu.memory_space<vmem>>, vector<1x1x4x16xf32>
    %1 = vector.shape_cast %0 : vector<1x1x4x16xf32> to vector<4x16xf32>
    %c0_3 = arith.constant 0 : index
    %c0_4 = arith.constant 0 : index
    %2 = vector.load %arg2[%c0_3, %c0_4] : memref<8x4xf32, #tpu.memory_space<vmem>>, vector<8x4xf32>
    %cst = arith.constant dense<0.000000e+00> : vector<8x16xf32>
    %3 = tpu.matmul %2, %1, %cst {dimension_numbers = #tpu.dot_dimension_numbers<[1], [0], [0], [1], [0, 0, 1, 1], [], []>} : vector<8x4xf32>, vector<4x16xf32>, vector<8x16xf32> -> vector<8x16xf32>
    %c0_5 = arith.constant 0 : index
    %c0_6 = arith.constant 0 : index
    %4 = vector.load %arg3[%c0_5, %c0_6] : memref<8x1xf32, #tpu.memory_space<vmem>>, vector<8x1xf32>
    %5 = vector.broadcast %4 : vector<8x1xf32> to vector<8x16xf32>
    %6 = arith.addf %3, %5 : vector<8x16xf32>
    %cst_7 = arith.constant 0.000000e+00 : f32
    %7 = vector.broadcast %cst_7 : f32 to vector<8x16xf32>
    %8 = arith.maximumf %6, %7 : vector<8x16xf32>
    %c0_8 = arith.constant 0 : index
    %c0_9 = arith.constant 0 : index
    %c0_10 = arith.constant 0 : index
    %9 = vector.load %arg4[%c0_8, %c0_9, %c0_10] : memref<1x8x16xf32, #tpu.memory_space<vmem>>, vector<1x8x16xf32>
    %10 = vector.shape_cast %9 : vector<1x8x16xf32> to vector<8x16xf32>
    %11 = vector.shape_cast %8 : vector<8x16xf32> to vector<1x8x16xf32>
    tpu.vector_store %arg4[%c0_8, %c0_9, %c0_10], %11 {strides = array<i32>} : memref<1x8x16xf32, #tpu.memory_space<vmem>>, vector<1x8x16xf32>,
    return
  }
  func.func @transform_0(%arg0: i32) -> (i32, i32, i32, i32) {
    %c0_i32 = arith.constant 0 : i32
    %c0_i32_0 = arith.constant 0 : i32
    %c0_i32_1 = arith.constant 0 : i32
    %c0_i32_2 = arith.constant 0 : i32
    return %arg0, %c0_i32, %c0_i32_0, %c0_i32_1 : i32, i32, i32, i32
  }
  func.func @transform_1(%arg0: i32) -> (i32, i32) {
    %c0_i32 = arith.constant 0 : i32
    %c0_i32_0 = arith.constant 0 : i32
    %c0_i32_1 = arith.constant 0 : i32
    return %c0_i32, %c0_i32_0 : i32, i32
  }
  func.func @transform_2(%arg0: i32) -> (i32, i32) {
    %c0_i32 = arith.constant 0 : i32
    %c0_i32_0 = arith.constant 0 : i32
    %c0_i32_1 = arith.constant 0 : i32
    return %c0_i32, %c0_i32_0 : i32, i32
  }
  func.func @transform_3(%arg0: i32) -> (i32, i32, i32) {
    %c0_i32 = arith.constant 0 : i32
    %c0_i32_0 = arith.constant 0 : i32
    %c0_i32_1 = arith.constant 0 : i32
    return %arg0, %c0_i32, %c0_i32_0 : i32, i32, i32
  }
}

</mosaic_0001>

<bundles_post_ra>
// kernel: tpu_custom_call.1
= control target key start
LH: loop header
LB: loop body
LE: loop exit
PB: predicated region body
PF: predicated region fallthrough
CT: control target
= control target key end

     0   :  { %8 = vsyncpa [#allocation3], 0  ;;  %s569_s0 = inlined_call_operand.vmem [shape: f32[2,1,4,16], index: 0, kind: input, shape index: {}]   ;;  %s570_s1 = inlined_call_operand.vmem [shape: f32[8,4], index: 1, kind: input, shape index: {}]   ;;  %s571_s2 = inlined_call_operand.vmem [shape: f32[8,1], index: 2, kind: input, shape index: {}]   ;;  %s572_s3 = inlined_call_operand.hbm [shape: f32[2,8,16], index: 3, kind: output, shape index: {}]  }
   0x1   :  { %10 = vsyncpa [#allocation3 + $0x1], 0  ;;  %s476_s12 = smov 0   ;;  %s478_s13 = smov 0  }
   0x2   :  { %s480_s14 = smov 0   ;;  %s482_s15 = smov 0  }
   0x3 LB: > { %s497_s16 = sadd.s32 4294967295, %s450_s15   ;;  %s328_s17 = sadd.s32 4294967294, %s450_s15   ;;  %s450_s15 = sphi %s482_s15, %s578_s15   ;;  %s446_s14 = sphi %s480_s14, %s577_s14   ;;  %s442_s13 = sphi %s478_s13, %s576_s13   ;;  %s438_s12 = sphi %s476_s12, %s575_s12  }
   0x4   : > { %s501_s18 = sadd.s32 1, %s450_s15   ;;  %s91_s19 = sadd.s32 1, %s446_s14 }
   0x5   : > { %s88_s20 = ssub.s32 %s450_s15, %s501_s18  ;;  %p101_p0 = scmp.ne.s32.totalorder %s446_s14, %s442_s13 }
   0x6   : > { %p89_p1 = scmp.eq.s32.totalorder %s88_s20, 0  ;;  %p102_p2 = scmp.eq.s32.totalorder %s497_s16, 1 }
   0x7   : > { %p107_p3 = scmp.ne.s32.totalorder %s442_s13, %s438_s12  ;;  %p108_p4 = scmp.eq.s32.totalorder %s328_s17, 1 }
   0x8   : > { %s512_s21 = scalar_select %p89_p1, %s446_s14, %s91_s19  }
   0x9   : > { %p514_p5 = por %p102_p2, %p101_p0  ;;  %p518_p6 = por %p108_p4, %p107_p3 }
   0xa   : > { %p331_p7 = scmp.ge.s32.totalorder %s450_s15, 1  ;;  %p139_p8 = scmp.lt.s32.totalorder %s450_s15, 3 }
   0xc   : > { %p140_p9 = pnand %p331_p7, %p139_p8 }
   0xd   : > { %p162_p10 = scmp.lt.s32.totalorder (!%p140_p9), %s497_s16, 1  ;;  %s159_s6 = sand.u32 (!%p140_p9), 1, %s442_s13  }
   0xe   : > { %143 = sbr.rel (%p140_p9) target bundleno = 235 (0xeb), region = 32  ;;  %s332_s7 = sshll.u32 (!%p140_p9), %s159_s6, 3 }
   0xf   : > { %s337_s8 = sshll.u32 (!%p140_p9), %s497_s16, 7  ;;  %s161_s9 = scalar_lea.vmem (!%p140_p9), [#allocation2], %s332_s7 }
  0x10   : > { %s269_s10 = sshll.u32 (!%p140_p9), %s161_s9, 4  ;;  %s267_s19 = scalar_lea.hbm (!%p140_p9), %s572_s3, %s337_s8  ;;  %s270_s10 = int_to_ptr.vmem [resolvable:$true] %s269_s10 }
  0x11   : > { %s256_s20 = scalar_lea.sflag (!%p140_p9), [#allocation3], %s159_s6  ;;  %s390_s24 = scalar_lea.vmem (!%p140_p9), %s270_s10, 128 }
  0x12   : > { %p391_p11 = scmp.ne.s32.totalorder (!%p140_p9), %s270_s10, %s390_s24  ;;  %s455_s25 = smov (!%p140_p9), [#allocation2]  }
  0x13   : > { %v452_v0 = vmov 0.0   ;;  %vm453_vm0 = vmmov 0   ;;  %v168_v1 = vld [vmem:[%s571_s2] sm:$0xff]  ;;  %s163_s26 = scalar_select %p162_p10, %s497_s16, 1  ;;  %v454_v2 = vmov 0   ;;  %vm178_vm1 = vcmask 1043456  }
  0x14   : > { %342 = vmatprep.subr.mxu0 %v452_v0  ;;  %344 = vmatprep.mubr.msk.f32.mxu0 %vm453_vm0, %v452_v0  ;;  %v167_v3 = vld [vmem:[%s570_s1] sm:$0xff]  ;;  %vm174_vm2 = vcmask 31744   ;;  %vm253_vm3 = vcmask 130048   ;;  %p392_p12 = pnand %p391_p11, %p514_p5  ;;  %s394_s16 = sshll.u32 %s455_s25, 4  ;;  %s395_s16 = int_to_ptr.vmem [resolvable:$false] %s394_s16 }
  0x15   : > { %389 = vset.pattern.permute.xlu0 %v454_v2  ;;  %s333_s27 = sshll.u32 %s163_s26, 2  ;;  %s396_s26 = scalar_lea.vmem %s395_s16, 256 }
  0x16   : > { %171 = vperm.xlu0 %389, %v168_v1   ;;  %s165_s30 = scalar_lea.vmem %s569_s0, %s333_s27  ;;  %p393_p13 = pneg %p392_p12 }
  0x17   : > { %v166_v4 = vld [vmem:[%s165_s30] sm:$0xf]  ;;  %p397_p0 = scmp.lt.s32.totalorder %s270_s10, %s395_s16  ;;  %p398_p1 = scmp.lt.s32.totalorder %s396_s26, %s390_s24 }
  0x18   : > { %343 = vmatpush3.msk.msra.mxu0 %vm178_vm1, %v166_v4 }
  0x19   : > { %345 = vmatmul.mubr.msk.f32.vlgmr.msra.gmra.mxu0 %vm174_vm2, %v167_v3  ;;  %p399_p2 = por %p398_p1, %p397_p0 }
  0x1b   : > { %p400_p3 = pnand %p399_p2, %p393_p13 }
  0x91   : > { %v172_v5 = vpop.permute.xlu0 %171 }
  0xd9   : > { %v248_v6 = vpop.f32.mrf.mxu0 }
  0xda   : > { %v249_v7 = vadd.f32 %v248_v6, %v172_v5 }
  0xdb   : > { %v346_v8 = vpop.f32.mrf.mxu0 }
  0xdc   : > { %v252_v9 = vmax.f32 %v249_v7, 0.0 }
  0xde   : > { %254 = vst.msk [vmem:[%s161_s9] sm:$0xff] %vm253_vm3, %v252_v9 }
  0xdf   : > { %403 = shalt.err (!%p400_p3)
}
  0xe0   : > { %s404_s27 = scalar_lea.hbm %s267_s19, 128  ;;  %s408_s30 = scalar_lea.hbm %s572_s3, 256 }
  0xe1   : > { %p405_p4 = scmp.ne.s32.totalorder %s267_s19, %s404_s27  ;;  %p409_p9 = scmp.lt.s32.totalorder %s267_s19, %s572_s3 }
  0xe2   : > { %p410_p10 = scmp.lt.s32.totalorder %s408_s30, %s404_s27 }
  0xe3   : > { %p406_p7 = pnand %p405_p4, %p514_p5 }
  0xe4   : > { %p411_p11 = por %p410_p10, %p409_p9 }
  0xe5   : > { %p407_p8 = pneg %p406_p7 }
  0xe7   : > { %p412_p12 = pnand %p411_p11, %p407_p8 }
  0xe9   : > { %415 = shalt.err (!%p412_p12)
}
  0xea   : > { %347 = dma.vmem_to_hbm [thread:$0]  (%p514_p5), %s270_s10, 128, %s267_s19, %s256_s20  }
  0xeb PF: > { %p353_p13 = scmp.ge.s32.totalorder %s450_s15, 2  ;;  %s281_s6 = sand.u32 1, %s438_s12  }
  0xec   : > { %s282_s7 = scalar_lea.sflag [#allocation3], %s281_s6 }
  0xed   : > { %p350_p0 = pnand %p353_p13, %p518_p6 }
  0xef   : > { %p351_p1 = pneg %p350_p0 }
  0xf1   : > { %433 = dma.done.wait (%p351_p1), %s282_s7, 128  }
  0xf2   : > { %435 = vsyncadd (%p351_p1), %s282_s7, 4294967168  ;;  %p13_p2 = scmp.ge.s32.totalorder %s501_s18, 4   ;;  %s575_s12 = smov %s442_s13 }
  0xf3   : > { %s576_s13 = smov %s446_s14  ;;  %s577_s14 = smov %s512_s21 }
  0xf4   : > { %s578_s15 = smov %s501_s18  ;;  %15 = sbr.rel (!%p13_p2) target bundleno = 3 (0x3), region = 67 }
  0xf9   :  { %287 = vsyncpa [#allocation3], 1 }
  0xfa   :  { %289 = vsyncpa [#allocation3 + $0x1], 1 }

</bundles_post_ra>
